<compile_context>
chip_gen: v7x
topology: tpu7x:2x2x1
jax: 0.10.0
libtpu: 0.0.40
codegen_flags: <defaults>
</compile_context>

<pallas_src>
import jax
import jax.numpy as jnp
from jax import lax
from jax.experimental import pallas as pl
from jax.experimental.pallas import tpu as pltpu


def _round_up(v, m):
    return (v + m - 1) // m * m


def _vmem_capacity_bytes():
    try:
        info = pltpu.get_tpu_info()
        cap = getattr(info, "vmem_capacity_bytes", None)
        if cap:
            return int(cap)
    except Exception:
        pass
    return 64 * 1024 * 1024          # conservative (v7x-sized) fallback


def _vmem_estimate(th, w, cin_p, cout_p):
    """Rough per-step VMEM bytes: double-buffered blocks + in-kernel temporaries."""
    m = th * w
    in_blk = th * (w + 1) * cin_p * 2               # bf16 input tile
    halo = (w + 1) * cin_p * 2                      # bf16 halo row
    out_blk = m * 4 * cout_p * 2                    # bf16 output tile
    wts = 9 * cin_p * cout_p * 2 + cout_p * 4       # K-stacked weights + bias
    temps = ((th + 1) * (w + 1) * cin_p * 2         # xe (row-halo concat)
             + m * 9 * cin_p * 2                    # K-stacked LHS copies
             + m * 4 * cout_p * 4)                  # f32 accumulators
    return 2 * (in_blk + halo + out_blk + wts) + temps


def _pick_tile_h(h, w, cin_p, cout_p, n_batch, budget_bytes):
    """Largest divisor of H that fits the VMEM budget; once the tile already has
    M = TH*W >= 256 we also keep >= 4 grid steps (megacore / pipeline overlap)."""
    best = 1
    for d in range(1, h + 1):
        if h % d:
            continue
        if _vmem_estimate(d, w, cin_p, cout_p) > budget_bytes:
            break
        if n_batch * (h // d) >= 4 or d * w < 256:
            best = d
        else:
            break
    return best


def _convtrans_phase_kernel(x_ref, halo_ref, w0_ref, w1_ref, w2_ref, w3_ref,
                            bias_ref, o_ref):
    """One (batch, row-tile) step of the phase-decomposed transposed conv.

    x_ref:    (1, TH, W+1, Cin_p)   bf16 input rows [t*TH, (t+1)*TH); col W is zero
    halo_ref: (1, 1,  W+1, Cin_p)   bf16 input row  (t+1)*TH (zero row at bottom)
    w*_ref:   (k*Cin_p, Cout_p)     bf16 K-stacked taps, BN scale already folded in
    bias_ref: (1, Cout_p)           f32 folded conv-bias + BN bias
    o_ref:    (1, TH, W, 4*Cout_p)  bf16, phase p = 2*(oh%2) + (ow%2) folded into lanes
    """
    _, TH, Wp1, Cin = x_ref.shape
    W = Wp1 - 1
    Cp = o_ref.shape[-1] // 4
    M = TH * W

    # Single row-halo concat; all shifted views are static slices of it (the zero
    # right-edge column was padded in the wrapper, so no in-kernel shifted copy).
    xe = jnp.concatenate([x_ref[0], halo_ref[0]], axis=0)     # (TH+1, W+1, Cin)
    x00 = xe[:TH, :W].reshape(M, Cin)       # x[h,   w  ]
    x01 = xe[:TH, 1:].reshape(M, Cin)       # x[h,   w+1]  (col W is the zero pad)
    x10 = xe[1:, :W].reshape(M, Cin)        # x[h+1, w  ]
    x11 = xe[1:, 1:].reshape(M, Cin)        # x[h+1, w+1]

    bias = bias_ref[...]                    # (1, Cout_p) f32

    def mm(lhs, w_ref):                     # bf16 x bf16 -> f32 accumulate on the MXU
        return lax.dot_general(lhs, w_ref[...], (((1,), (0,)), ((), ())),
                               preferred_element_type=jnp.float32)

    def store(p, acc):                      # bias + ReLU epilogue, lane-dense bf16 store
        y = jnp.maximum(acc + bias, 0.0)
        o_ref[0, :, :, p * Cp:(p + 1) * Cp] = y.reshape(TH, W, Cp).astype(o_ref.dtype)

    # Output (2a+j, 2b+i): the taps of each phase are stacked along K inside w*_ref,
    # so each phase is a single MXU call with in-MXU accumulation.
    store(0, mm(x00, w0_ref))                                               # even, even
    store(1, mm(jnp.concatenate([x00, x01], axis=1), w1_ref))               # even, odd
    store(2, mm(jnp.concatenate([x00, x10], axis=1), w2_ref))               # odd,  even
    store(3, mm(jnp.concatenate([x00, x01, x10, x11], axis=1), w3_ref))     # odd,  odd


def conv_trans2d_forward(x_nchw, w_t, b_conv, bn_gamma, bn_beta, bn_mean, bn_var,
                         eps=1e-5):
    """ConvTranspose2d(in,out,3,stride=2,pad=1,out_pad=1) + BN(eval) + ReLU.

    x_nchw: (N, Cin, H, W) float32
    w_t:    (Cin, Cout, 3, 3)  (PyTorch ConvTranspose2d weight layout)
    returns (N, Cout, 2H, 2W) float32
    """
    N, Cin, H, W = x_nchw.shape
    Cout = w_t.shape[1]
    Cin_p = _round_up(Cin, 16)      # sublane/pack-friendly contraction dim
    Cout_p = _round_up(Cout, 128)   # lane-dense output stores

    cap = _vmem_capacity_bytes()
    vmem_limit = int(cap * 3 // 4)               # ~96 MiB on v5e/v6e, ~48 MiB on v7x
    tile_budget = int(cap * 0.55)                # leave headroom inside the limit
    TH = _pick_tile_h(H, W, Cin_p, Cout_p, N, tile_budget)
    nH = H // TH

    # ---- glue (one fused pass): NCHW -> NHWC, +1 zero row (bottom) for the vertical
    # halo, +1 zero col (right) for the horizontal taps, channel pad, bf16 cast ----
    x = jnp.transpose(x_nchw, (0, 2, 3, 1))
    x = jnp.pad(x, ((0, 0), (0, 1), (0, 1), (0, Cin_p - Cin))).astype(jnp.bfloat16)

    # Weights: (Cin,Cout,3,3) -> per-tap (Cin_p,Cout_p) with the eval-mode BN scale
    # folded in (in f32, before the bf16 cast), then K-stacked per phase so the
    # stacking order matches the in-kernel LHS lane-concat order.  No spatial flip:
    # the phase decomposition follows the transposed-conv definition directly.
    inv_std = 1.0 / jnp.sqrt(bn_var + eps)
    scale_c = (bn_gamma * inv_std).astype(jnp.float32)
    wk = jnp.transpose(w_t, (2, 3, 0, 1)).astype(jnp.float32) * scale_c  # (3,3,Cin,Cout)
    wk = jnp.pad(wk, ((0, 0), (0, 0), (0, Cin_p - Cin), (0, Cout_p - Cout)))
    wk = wk.astype(jnp.bfloat16)
    w0 = wk[1, 1]                                                        # (Cin_p, Cout_p)
    w1 = jnp.concatenate([wk[1, 2], wk[1, 0]], axis=0)                   # (2*Cin_p, Cout_p)
    w2 = jnp.concatenate([wk[2, 1], wk[0, 1]], axis=0)                   # (2*Cin_p, Cout_p)
    w3 = jnp.concatenate([wk[2, 2], wk[2, 0], wk[0, 2], wk[0, 0]], axis=0)  # (4*Cin_p,Cout_p)

    bias_c = ((b_conv - bn_mean) * scale_c + bn_beta).astype(jnp.float32)
    bias = jnp.pad(bias_c, (0, Cout_p - Cout)).reshape(1, Cout_p)

    out = pl.pallas_call(
        _convtrans_phase_kernel,
        out_shape=jax.ShapeDtypeStruct((N, H, W, 4 * Cout_p), jnp.bfloat16),
        grid_spec=pltpu.PrefetchScalarGridSpec(
            num_scalar_prefetch=0,
            grid=(N, nH),
            in_specs=[
                # current row tile (includes the padded zero right column)
                pl.BlockSpec((1, TH, W + 1, Cin_p), lambda n, t: (n, t, 0, 0)),
                # 1-row halo (same array passed again; row (t+1)*TH, zero row at bottom)
                pl.BlockSpec((1, 1, W + 1, Cin_p), lambda n, t: (n, (t + 1) * TH, 0, 0)),
                # grid-invariant K-stacked weights + bias
                pl.BlockSpec((Cin_p, Cout_p), lambda n, t: (0, 0)),
                pl.BlockSpec((2 * Cin_p, Cout_p), lambda n, t: (0, 0)),
                pl.BlockSpec((2 * Cin_p, Cout_p), lambda n, t: (0, 0)),
                pl.BlockSpec((4 * Cin_p, Cout_p), lambda n, t: (0, 0)),
                pl.BlockSpec((1, Cout_p), lambda n, t: (0, 0)),
            ],
            out_specs=pl.BlockSpec((1, TH, W, 4 * Cout_p), lambda n, t: (n, t, 0, 0)),
        ),
        compiler_params=pltpu.CompilerParams(
            dimension_semantics=("parallel", "parallel"),
            vmem_limit_bytes=vmem_limit,
        ),
    )(x, x, w0, w1, w2, w3, bias)

    # Phase un-interleave: slice padded channels FIRST (Cout_p -> Cout), then a single
    # (now much smaller, bf16-input) transpose to NCHW; the f32 cast rides its output.
    out = out.reshape(N, H, W, 2, 2, Cout_p)[..., :Cout]
    out = jnp.transpose(out, (0, 5, 1, 3, 2, 4)).reshape(N, Cout, 2 * H, 2 * W)
    return out.astype(jnp.float32)


def _reference(x_nchw, w_t, b_conv, bn_gamma, bn_beta, bn_mean, bn_var, eps=1e-5):
    """Pure-XLA f32 reference using lhs-dilated conv (== ConvTranspose2d)."""
    Cout = w_t.shape[1]
    w_conv = jnp.transpose(jnp.flip(w_t, axis=(2, 3)), (1, 0, 2, 3))  # (Cout,Cin,3,3)
    y = lax.conv_general_dilated(
        x_nchw, w_conv,
        window_strides=(1, 1),
        padding=((1, 2), (1, 2)),
        lhs_dilation=(2, 2),
        dimension_numbers=("NCHW", "OIHW", "NCHW"),
        precision=lax.Precision.HIGHEST,
    ) + b_conv.reshape(1, Cout, 1, 1)
    inv_std = 1.0 / jnp.sqrt(bn_var + eps)
    y = (y - bn_mean.reshape(1, Cout, 1, 1)) * (bn_gamma * inv_std).reshape(1, Cout, 1, 1) \
        + bn_beta.reshape(1, Cout, 1, 1)
    return jnp.maximum(y, 0.0)


if __name__ == "__main__":
    key = jax.random.PRNGKey(0)
    N, Cin, Cout, H, W = 2, 4, 8, 16, 16

    k_x, k_w, k_b, k_g, k_be, k_m, k_v = jax.random.split(key, 7)
    x = jax.random.normal(k_x, (N, Cin, H, W), jnp.float32)
    # ConvTranspose2d weight layout: (in_ch, out_ch, kH, kW)
    w_t = jax.random.normal(k_w, (Cin, Cout, 3, 3), jnp.float32) * 0.1
    b_conv = jax.random.normal(k_b, (Cout,), jnp.float32) * 0.1
    bn_gamma = 1.0 + 0.1 * jax.random.normal(k_g, (Cout,), jnp.float32)
    bn_beta = 0.1 * jax.random.normal(k_be, (Cout,), jnp.float32)
    bn_mean = 0.1 * jax.random.normal(k_m, (Cout,), jnp.float32)
    bn_var = jnp.abs(jax.random.normal(k_v, (Cout,), jnp.float32)) + 0.5

    fwd = jax.jit(conv_trans2d_forward)
    out = fwd(x, w_t, b_conv, bn_gamma, bn_beta, bn_mean, bn_var)
    out = jax.block_until_ready(out)

    ref = _reference(x, w_t, b_conv, bn_gamma, bn_beta, bn_mean, bn_var)
    assert out.shape == (N, Cout, 2 * H, 2 * W), out.shape
    # bf16 MXU inputs / bf16 kernel output (f32 accumulation) vs f32/HIGHEST reference
    # -> loosened tolerance.
    max_err = float(jnp.max(jnp.abs(out - ref)))
    assert jnp.allclose(out, ref, rtol=6e-2, atol=6e-2), max_err

    print("KERNEL_OK")
</pallas_src>

<mosaic_0001>
module attributes {stable_mosaic.version = 11 : i64} {
  func.func @_convtrans_phase_kernel(%arg0: i32, %arg1: i32, %arg2: memref<1x8x17x16xbf16, #tpu.memory_space<vmem>>, %arg3: memref<1x1x17x16xbf16, #tpu.memory_space<vmem>>, %arg4: memref<16x128xbf16, #tpu.memory_space<vmem>>, %arg5: memref<32x128xbf16, #tpu.memory_space<vmem>>, %arg6: memref<32x128xbf16, #tpu.memory_space<vmem>>, %arg7: memref<64x128xbf16, #tpu.memory_space<vmem>>, %arg8: memref<1x128xf32, #tpu.memory_space<vmem>>, %arg9: memref<1x8x16x512xbf16, #tpu.memory_space<vmem>>) attributes {dimension_semantics = [#tpu.dimension_semantics<parallel>, #tpu.dimension_semantics<parallel>], iteration_bounds = array<i64: 2, 2>, scalar_prefetch = 0 : i64, scratch_operands = 0 : i64, tpu.core_type = #tpu.core_type<tc>, window_params = [{transform_indices = @transform_0, window_bounds = array<i64: 1, 8, 17, 16>}, {transform_indices = @transform_1, window_bounds = array<i64: 1, 1, 17, 16>}, {pipeline_mode = #tpu.pipeline_mode<synchronous>, transform_indices = @transform_2, window_bounds = array<i64: 16, 128>}, {pipeline_mode = #tpu.pipeline_mode<synchronous>, transform_indices = @transform_3, window_bounds = array<i64: 32, 128>}, {pipeline_mode = #tpu.pipeline_mode<synchronous>, transform_indices = @transform_4, window_bounds = array<i64: 32, 128>}, {pipeline_mode = #tpu.pipeline_mode<synchronous>, transform_indices = @transform_5, window_bounds = array<i64: 64, 128>}, {pipeline_mode = #tpu.pipeline_mode<synchronous>, transform_indices = @transform_6, window_bounds = array<i64: 1, 128>}, {transform_indices = @transform_7, window_bounds = array<i64: 1, 8, 16, 512>}]} {
    %c0 = arith.constant 0 : index
    %c0_0 = arith.constant 0 : index
    %c0_1 = arith.constant 0 : index
    %c0_2 = arith.constant 0 : index
    %0 = vector.load %arg2[%c0, %c0_0, %c0_1, %c0_2] : memref<1x8x17x16xbf16, #tpu.memory_space<vmem>>, vector<1x8x17x16xbf16>
    %1 = vector.shape_cast %0 : vector<1x8x17x16xbf16> to vector<8x17x16xbf16>
    %c0_3 = arith.constant 0 : index
    %c0_4 = arith.constant 0 : index
    %c0_5 = arith.constant 0 : index
    %c0_6 = arith.constant 0 : index
    %2 = vector.load %arg3[%c0_3, %c0_4, %c0_5, %c0_6] : memref<1x1x17x16xbf16, #tpu.memory_space<vmem>>, vector<1x1x17x16xbf16>
    %3 = vector.shape_cast %2 : vector<1x1x17x16xbf16> to vector<1x17x16xbf16>
    %4 = tpu.concatenate %1, %3 in 0 : vector<8x17x16xbf16>, vector<1x17x16xbf16> -> vector<9x17x16xbf16>
    %5 = vector.extract_strided_slice %4 {offsets = [0, 0, 0], sizes = [8, 16, 16], strides = [1, 1, 1]} : vector<9x17x16xbf16> to vector<8x16x16xbf16>
    %6 = vector.shape_cast %5 : vector<8x16x16xbf16> to vector<128x16xbf16>
    %7 = vector.extract_strided_slice %4 {offsets = [0, 1, 0], sizes = [8, 16, 16], strides = [1, 1, 1]} : vector<9x17x16xbf16> to vector<8x16x16xbf16>
    %8 = vector.shape_cast %7 : vector<8x16x16xbf16> to vector<128x16xbf16>
    %9 = vector.extract_strided_slice %4 {offsets = [1, 0, 0], sizes = [8, 16, 16], strides = [1, 1, 1]} : vector<9x17x16xbf16> to vector<8x16x16xbf16>
    %10 = vector.shape_cast %9 : vector<8x16x16xbf16> to vector<128x16xbf16>
    %11 = vector.extract_strided_slice %4 {offsets = [1, 1, 0], sizes = [8, 16, 16], strides = [1, 1, 1]} : vector<9x17x16xbf16> to vector<8x16x16xbf16>
    %12 = vector.shape_cast %11 : vector<8x16x16xbf16> to vector<128x16xbf16>
    %c0_7 = arith.constant 0 : index
    %c0_8 = arith.constant 0 : index
    %13 = vector.load %arg8[%c0_7, %c0_8] : memref<1x128xf32, #tpu.memory_space<vmem>>, vector<1x128xf32>
    %c0_9 = arith.constant 0 : index
    %c0_10 = arith.constant 0 : index
    %14 = vector.load %arg4[%c0_9, %c0_10] : memref<16x128xbf16, #tpu.memory_space<vmem>>, vector<16x128xbf16>
    %cst = arith.constant dense<0.000000e+00> : vector<128x128xf32>
    %15 = tpu.matmul %6, %14, %cst {dimension_numbers = #tpu.dot_dimension_numbers<[1], [0], [0], [1], [0, 0, 1, 1], [], []>} : vector<128x16xbf16>, vector<16x128xbf16>, vector<128x128xf32> -> vector<128x128xf32>
    %16 = vector.broadcast %13 : vector<1x128xf32> to vector<128x128xf32>
    %17 = arith.addf %15, %16 : vector<128x128xf32>
    %cst_11 = arith.constant 0.000000e+00 : f32
    %18 = vector.broadcast %cst_11 : f32 to vector<128x128xf32>
    %19 = arith.maximumf %17, %18 : vector<128x128xf32>
    %20 = vector.shape_cast %19 : vector<128x128xf32> to vector<8x16x128xf32>
    %21 = arith.truncf %20 : vector<8x16x128xf32> to vector<8x16x128xbf16>
    %c0_12 = arith.constant 0 : index
    %c0_13 = arith.constant 0 : index
    %c0_14 = arith.constant 0 : index
    %c0_15 = arith.constant 0 : index
    %22 = vector.load %arg9[%c0_12, %c0_13, %c0_14, %c0_15] : memref<1x8x16x512xbf16, #tpu.memory_space<vmem>>, vector<1x8x16x128xbf16>
    %23 = vector.shape_cast %22 : vector<1x8x16x128xbf16> to vector<8x16x128xbf16>
    %24 = vector.shape_cast %21 : vector<8x16x128xbf16> to vector<1x8x16x128xbf16>
    tpu.vector_store %arg9[%c0_12, %c0_13, %c0_14, %c0_15], %24 {strides = array<i32>} : memref<1x8x16x512xbf16, #tpu.memory_space<vmem>>, vector<1x8x16x128xbf16>,
    %25 = tpu.concatenate %6, %8 in 1 : vector<128x16xbf16>, vector<128x16xbf16> -> vector<128x32xbf16>
    %c0_16 = arith.constant 0 : index
    %c0_17 = arith.constant 0 : index
    %26 = vector.load %arg5[%c0_16, %c0_17] : memref<32x128xbf16, #tpu.memory_space<vmem>>, vector<32x128xbf16>
    %cst_18 = arith.constant dense<0.000000e+00> : vector<128x128xf32>
    %27 = tpu.matmul %25, %26, %cst_18 {dimension_numbers = #tpu.dot_dimension_numbers<[1], [0], [0], [1], [0, 0, 1, 1], [], []>} : vector<128x32xbf16>, vector<32x128xbf16>, vector<128x128xf32> -> vector<128x128xf32>
    %28 = vector.broadcast %13 : vector<1x128xf32> to vector<128x128xf32>
    %29 = arith.addf %27, %28 : vector<128x128xf32>
    %cst_19 = arith.constant 0.000000e+00 : f32
    %30 = vector.broadcast %cst_19 : f32 to vector<128x128xf32>
    %31 = arith.maximumf %29, %30 : vector<128x128xf32>
    %32 = vector.shape_cast %31 : vector<128x128xf32> to vector<8x16x128xf32>
    %33 = arith.truncf %32 : vector<8x16x128xf32> to vector<8x16x128xbf16>
    %c0_20 = arith.constant 0 : index
    %c0_21 = arith.constant 0 : index
    %c0_22 = arith.constant 0 : index
    %c128 = arith.constant 128 : index
    %34 = vector.load %arg9[%c0_20, %c0_21, %c0_22, %c128] : memref<1x8x16x512xbf16, #tpu.memory_space<vmem>>, vector<1x8x16x128xbf16>
    %35 = vector.shape_cast %34 : vector<1x8x16x128xbf16> to vector<8x16x128xbf16>
    %36 = vector.shape_cast %33 : vector<8x16x128xbf16> to vector<1x8x16x128xbf16>
    tpu.vector_store %arg9[%c0_20, %c0_21, %c0_22, %c128], %36 {strides = array<i32>} : memref<1x8x16x512xbf16, #tpu.memory_space<vmem>>, vector<1x8x16x128xbf16>,
    %37 = tpu.concatenate %6, %10 in 1 : vector<128x16xbf16>, vector<128x16xbf16> -> vector<128x32xbf16>
    %c0_23 = arith.constant 0 : index
    %c0_24 = arith.constant 0 : index
    %38 = vector.load %arg6[%c0_23, %c0_24] : memref<32x128xbf16, #tpu.memory_space<vmem>>, vector<32x128xbf16>
    %cst_25 = arith.constant dense<0.000000e+00> : vector<128x128xf32>
    %39 = tpu.matmul %37, %38, %cst_25 {dimension_numbers = #tpu.dot_dimension_numbers<[1], [0], [0], [1], [0, 0, 1, 1], [], []>} : vector<128x32xbf16>, vector<32x128xbf16>, vector<128x128xf32> -> vector<128x128xf32>
    %40 = vector.broadcast %13 : vector<1x128xf32> to vector<128x128xf32>
    %41 = arith.addf %39, %40 : vector<128x128xf32>
    %cst_26 = arith.constant 0.000000e+00 : f32
    %42 = vector.broadcast %cst_26 : f32 to vector<128x128xf32>
    %43 = arith.maximumf %41, %42 : vector<128x128xf32>
    %44 = vector.shape_cast %43 : vector<128x128xf32> to vector<8x16x128xf32>
    %45 = arith.truncf %44 : vector<8x16x128xf32> to vector<8x16x128xbf16>
    %c0_27 = arith.constant 0 : index
    %c0_28 = arith.constant 0 : index
    %c0_29 = arith.constant 0 : index
    %c256 = arith.constant 256 : index
    %46 = vector.load %arg9[%c0_27, %c0_28, %c0_29, %c256] : memref<1x8x16x512xbf16, #tpu.memory_space<vmem>>, vector<1x8x16x128xbf16>
    %47 = vector.shape_cast %46 : vector<1x8x16x128xbf16> to vector<8x16x128xbf16>
    %48 = vector.shape_cast %45 : vector<8x16x128xbf16> to vector<1x8x16x128xbf16>
    tpu.vector_store %arg9[%c0_27, %c0_28, %c0_29, %c256], %48 {strides = array<i32>} : memref<1x8x16x512xbf16, #tpu.memory_space<vmem>>, vector<1x8x16x128xbf16>,
    %49 = tpu.concatenate %6, %8, %10, %12 in 1 : vector<128x16xbf16>, vector<128x16xbf16>, vector<128x16xbf16>, vector<128x16xbf16> -> vector<128x64xbf16>
    %c0_30 = arith.constant 0 : index
    %c0_31 = arith.constant 0 : index
    %50 = vector.load %arg7[%c0_30, %c0_31] : memref<64x128xbf16, #tpu.memory_space<vmem>>, vector<64x128xbf16>
    %cst_32 = arith.constant dense<0.000000e+00> : vector<128x128xf32>
    %51 = tpu.matmul %49, %50, %cst_32 {dimension_numbers = #tpu.dot_dimension_numbers<[1], [0], [0], [1], [0, 0, 1, 1], [], []>} : vector<128x64xbf16>, vector<64x128xbf16>, vector<128x128xf32> -> vector<128x128xf32>
    %52 = vector.broadcast %13 : vector<1x128xf32> to vector<128x128xf32>
    %53 = arith.addf %51, %52 : vector<128x128xf32>
    %cst_33 = arith.constant 0.000000e+00 : f32
    %54 = vector.broadcast %cst_33 : f32 to vector<128x128xf32>
    %55 = arith.maximumf %53, %54 : vector<128x128xf32>
    %56 = vector.shape_cast %55 : vector<128x128xf32> to vector<8x16x128xf32>
    %57 = arith.truncf %56 : vector<8x16x128xf32> to vector<8x16x128xbf16>
    %c0_34 = arith.constant 0 : index
    %c0_35 = arith.constant 0 : index
    %c0_36 = arith.constant 0 : index
    %c384 = arith.constant 384 : index
    %58 = vector.load %arg9[%c0_34, %c0_35, %c0_36, %c384] : memref<1x8x16x512xbf16, #tpu.memory_space<vmem>>, vector<1x8x16x128xbf16>
    %59 = vector.shape_cast %58 : vector<1x8x16x128xbf16> to vector<8x16x128xbf16>
    %60 = vector.shape_cast %57 : vector<8x16x128xbf16> to vector<1x8x16x128xbf16>
    tpu.vector_store %arg9[%c0_34, %c0_35, %c0_36, %c384], %60 {strides = array<i32>} : memref<1x8x16x512xbf16, #tpu.memory_space<vmem>>, vector<1x8x16x128xbf16>,
    return
  }
  func.func @transform_0(%arg0: i32, %arg1: i32) -> (i32, i32, i32, i32) {
    %c0_i32 = arith.constant 0 : i32
    %c0_i32_0 = arith.constant 0 : i32
    %c0_i32_1 = arith.constant 0 : i32
    return %arg0, %arg1, %c0_i32, %c0_i32_0 : i32, i32, i32, i32
  }
  func.func @transform_1(%arg0: i32, %arg1: i32) -> (i32, i32, i32, i32) {
    %c1_i32 = arith.constant 1 : i32
    %0 = arith.addi %arg1, %c1_i32 : i32
    %c8_i32 = arith.constant 8 : i32
    %1 = arith.muli %0, %c8_i32 : i32
    %c0_i32 = arith.constant 0 : i32
    %c0_i32_0 = arith.constant 0 : i32
    %c0_i32_1 = arith.constant 0 : i32
    return %arg0, %1, %c0_i32, %c0_i32_0 : i32, i32, i32, i32
  }
  func.func @transform_2(%arg0: i32, %arg1: i32) -> (i32, i32) {
    %c0_i32 = arith.constant 0 : i32
    %c0_i32_0 = arith.constant 0 : i32
    %c0_i32_1 = arith.constant 0 : i32
    return %c0_i32, %c0_i32_0 : i32, i32
  }
  func.func @transform_3(%arg0: i32, %arg1: i32) -> (i32, i32) {
    %c0_i32 = arith.constant 0 : i32
    %c0_i32_0 = arith.constant 0 : i32
    %c0_i32_1 = arith.constant 0 : i32
    return %c0_i32, %c0_i32_0 : i32, i32
  }
  func.func @transform_4(%arg0: i32, %arg1: i32) -> (i32, i32) {
    %c0_i32 = arith.constant 0 : i32
    %c0_i32_0 = arith.constant 0 : i32
    %c0_i32_1 = arith.constant 0 : i32
    return %c0_i32, %c0_i32_0 : i32, i32
  }
  func.func @transform_5(%arg0: i32, %arg1: i32) -> (i32, i32) {
    %c0_i32 = arith.constant 0 : i32
    %c0_i32_0 = arith.constant 0 : i32
    %c0_i32_1 = arith.constant 0 : i32
    return %c0_i32, %c0_i32_0 : i32, i32
  }
  func.func @transform_6(%arg0: i32, %arg1: i32) -> (i32, i32) {
    %c0_i32 = arith.constant 0 : i32
    %c0_i32_0 = arith.constant 0 : i32
    %c0_i32_1 = arith.constant 0 : i32
    return %c0_i32, %c0_i32_0 : i32, i32
  }
  func.func @transform_7(%arg0: i32, %arg1: i32) -> (i32, i32, i32, i32) {
    %c0_i32 = arith.constant 0 : i32
    %c0_i32_0 = arith.constant 0 : i32
    %c0_i32_1 = arith.constant 0 : i32
    return %arg0, %arg1, %c0_i32, %c0_i32_0 : i32, i32, i32, i32
  }
}

</mosaic_0001>

<bundles_post_ra>
// kernel: conv_trans2d_forward.1
= control target key start
LH: loop header
LB: loop body
LE: loop exit
PB: predicated region body
PF: predicated region fallthrough
CT: control target
= control target key end

     0   :  { %s2371_s24 = smov 0   ;;  %s2373_s25 = smov 0   ;;  %s2931_s0 = inlined_call_operand.vmem [shape: bf16[2,17,17,16], index: 0, kind: input, shape index: {}, may-alias: {0,1}]   ;;  %s2932_s1 = inlined_call_operand.vmem [shape: bf16[2,17,17,16], index: 1, kind: input, shape index: {}, may-alias: {0,1}]   ;;  %s2933_s2 = inlined_call_operand.vmem [shape: bf16[16,128], index: 2, kind: input, shape index: {}]   ;;  %s2934_s3 = inlined_call_operand.vmem [shape: bf16[32,128], index: 3, kind: input, shape index: {}]   ;;  %s2935_s4 = inlined_call_operand.vmem [shape: bf16[32,128], index: 4, kind: input, shape index: {}]   ;;  %s2936_s5 = inlined_call_operand.vmem [shape: bf16[64,128], index: 5, kind: input, shape index: {}]   ;;  %s2937_s6 = inlined_call_operand.vmem [shape: f32[1,128], index: 6, kind: input, shape index: {}]   ;;  %s2938_s7 = inlined_call_operand.vmem [shape: bf16[2,16,16,512], index: 7, kind: output, shape index: {}]  }
   0x1   :  { %s2375_s26 = smov 0   ;;  %s2377_s27 = smov 0  }
   0x2   :  { %s2379_s28 = smov 0  }
   0x3 LB: > { %s26_s29 = sadd.s32 1, %s2318_s26  ;;  %s29_s30 = sadd.s32 1, %s2322_s27  ;;  %s2326_s28 = sphi %s2379_s28, %s17_s28   ;;  %s2322_s27 = sphi %s2377_s27, %s2945_s27   ;;  %s2318_s26 = sphi %s2375_s26, %s2944_s26   ;;  %s2314_s25 = sphi %s2373_s25, %s2943_s25   ;;  %s2310_s24 = sphi %s2371_s24, %s2942_s24  }
   0x4   : > { %p27_p0 = scmp.ge.s32.totalorder %s26_s29, 2  ;;  %p1896_p1 = scmp.ge.s32.totalorder %s2326_s28, 1 }
   0x5   : > { %p293_p2 = scmp.lt.s32.totalorder %s2326_s28, 5 }
   0x6   : > { %s2947_s29 = smov (%p27_p0, %s26_s29), 0  ;;  %s2949_s30 = smov (!%p27_p0, %s29_s30), %s2322_s27 }
   0x7   : > { %p294_p3 = pnand %p1896_p1, %p293_p2  ;;  %p31_p4 = scmp.ge.s32.totalorder %s2949_s30, 2 }
   0x8   : > { %s2401_s8 = sshll.u32 (!%p294_p3), %s2310_s24, 3  ;;  %p357_p5 = scmp.lt.s32.totalorder (!%p294_p3), %s2314_s25, 1  ;;  %v2278_v0 = vld [vmem:[%s2933_s2] sm:$0xff] (!%p294_p3)   ;;  %vm424_vm0 = vsmask.f32 (!%p294_p3), 3328  ;;  %vm698_vm3 = vcmask (!%p294_p3), 130048  }
   0x9   : > { %s2951_s30 = smov (%p31_p4, %s2949_s30), 0  ;;  %297 = sbr.rel (%p294_p3) target bundleno = 445 (0x1bd), region = 48 }
   0xa   : > { %p359_p6 = scmp.lt.s32.totalorder (!%p294_p3), %s2401_s8, 16  ;;  %p388_p7 = scmp.lt.s32.totalorder (!%p294_p3), %s2401_s8, 15  ;;  %v2280_v1 = vld [vmem:[%s2934_s3] sm:$0xff] (!%p294_p3)   ;;  %2142 = vmatprep.subr.bf16.mxu0 (!%p294_p3), %v2278_v0  ;;  %vm425_vm1 = vsmask.f32 (!%p294_p3), 7440  ;;  %vm988_vm4 = vcmask (!%p294_p3), 261120  }
   0xb   : > { %2160 = vmatprep.subr.bf16.mxu1 (!%p294_p3), %v2280_v1  ;;  %2143 = vmatpush3.bf16.msra.mxu0 (!%p294_p3), %v2278_v0  ;;  %s2328_s9 = smov (!%p294_p3), 16   ;;  %vm2462_vm2 = vmor (!%p294_p3), %vm424_vm0, %vm425_vm1  ;;  %s2036_s10 = sadd.s32 (!%p294_p3), 8, %s2401_s8  ;;  %vm1511_vm5 = vcmask (!%p294_p3), 392192   ;;  %vm1560_vm6 = vcmask (!%p294_p3), 523264  }
   0xc   : > { %2161 = vmatpush3.bf16.msra.mxu1 (!%p294_p3), %v2280_v1  ;;  %p2476_p8 = scmp.lt.s32.totalorder (!%p294_p3), %s2036_s10, 16  ;;  %s2329_s22 = smov (!%p294_p3), 32  }
  0x10   : > { %s2953_s25 = smov (!%p357_p5, %s2314_s25), 1  ;;  %s2955_s10 = smov (!%p2476_p8, %s2036_s10), 16 }
  0x11   : > { %s360_s13 = scalar_select %p359_p6, %s2401_s8, 16 }
  0x12   : > { %s2225_s14 = smul.u32 51, %s2953_s25  ;;  %s1903_s16 = sshll.u32 %s2953_s25, 7 }
  0x13   : > { %s2224_s15 = smul.u32 3, %s360_s13 }
  0x14   : > { %s389_s17 = scalar_select %p388_p7, %s2401_s8, 15 }
  0x15   : > { %s363_s18 = sadd.s32 %s2225_s14, %s2224_s15  ;;  %s2226_s8 = smul.u32 3, %s2955_s10 }
  0x16   : > { %s1898_s19 = sshll.u32 %s363_s18, 2  ;;  %s1902_s20 = sshll.u32 %s389_s17, 3 }
  0x17   : > { %s2422_s23 = scalar_lea.vmem %s2931_s0, %s1898_s19  ;;  %s2424_s24 = sadd.s32 %s1903_s16, %s1902_s20 }
  0x18   : > { %v2427_v2 = vld [vmem:[%s2422_s23 + $0xc] sm:$0xf]  ;;  %v2430_v3 = vld [vmem:[%s2422_s23 + $0x10] sm:$0xf]  ;;  %v403_v5 = vld [vmem:[%s2422_s23 + $0x18] sm:$0xf]  ;;  %s2527_s19 = sadd.s32 %s2226_s8, %s2225_s14 }
  0x19   : > { %v2434_v4 = vcombine.low %v2427_v2, %v2430_v3  ;;  %v404_v6 = vld [vmem:[%s2422_s23 + $0x1c] sm:$0xf]  ;;  %v405_v7 = vld [vmem:[%s2422_s23 + $0x20] sm:$0x1]  ;;  %v476_v8 = vshrl.u32 %v403_v5, 16  ;;  %v479_v9 = vshll.u32 %v403_v5, 16 }
  0x1a   : > { %v485_v10 = vshll.u32 %v404_v6, 16  ;;  %v489_v11 = vshrl.u32 %v404_v6, 16  ;;  %v2440_v12 = vld [vmem:[%s2422_s23] sm:$0xf]  ;;  %v495_v13 = vshll.u32 %v405_v7, 16  ;;  %v2449_v17 = vcombine.low %v403_v5, %v404_v6  ;;  %s1900_s25 = sshll.u32 %s2527_s19, 2 }
  0x1b   : > { %1203 = vrot.lane.b32.xlu1 %v2434_v4, %s2328_s9  ;;  %v2445_v14 = vld [vmem:[%s2422_s23 + $0x4] sm:$0xf]  ;;  %v399_v15 = vld [vmem:[%s2422_s23 + $0x8] sm:$0x1]  ;;  %v428_v16 = vshrl.u32 %v2440_v12, 16  ;;  %v478_v18 = vrot.slane %v476_v8, 4  ;;  %s382_s21 = scalar_lea.vmem %s2932_s1, %s1900_s25 }
  0x1c   : > { %v481_v19 = vrot.slane %v479_v9, 5  ;;  %v487_v20 = vrot.slane %v485_v10, 5  ;;  %v491_v21 = vrot.slane %v489_v11, 4  ;;  %v2452_v22 = vld [vmem:[%s2422_s23 + $0x24] sm:$0xf]  ;;  %v497_v23 = vrot.slane %v495_v13, 5 }
  0x1d   : > { %v430_v24 = vrot.slane %v428_v16, 4  ;;  %v431_v25 = vshll.u32 %v2440_v12, 16  ;;  %v437_v26 = vshll.u32 %v2445_v14, 16  ;;  %v441_v29 = vshrl.u32 %v2445_v14, 16  ;;  %v2458_v31 = vld [vmem:[%s2422_s23 + $0x28] sm:$0xf] }
  0x1e   : > { %v482_v27 = vor.u32 %v481_v19, %v478_v18  ;;  %v492_v28 = vor.u32 %v491_v21, %v487_v20  ;;  %v447_v30 = vshll.u32 %v399_v15, 16  ;;  %v500_v35 = vshrl.u32 %v2452_v22, 16  ;;  %v408_v42 = vld [vmem:[%s2422_s23 + $0x2c] sm:$0x1]  ;;  %v402_v57 = vld [vmem:[%s2422_s23 + $0x14] sm:$0x1] }
  0x1f   : > { %v433_v33 = vrot.slane %v431_v25, 5  ;;  %v439_v34 = vrot.slane %v437_v26, 5  ;;  %v503_v36 = vshll.u32 %v2452_v22, 16  ;;  %v443_v39 = vrot.slane %v441_v29, 4  ;;  %v2491_v63 = vld [vmem:[%s2422_s23 + $0x3c] sm:$0xf] }
  0x20   : > { %v483_v37 = vrot.slane %v482_v27, 4  ;;  %v493_v38 = vrot.slane %v492_v28, 4  ;;  %v449_v40 = vrot.slane %v447_v30, 5  ;;  %v502_v43 = vrot.slane %v500_v35, 4  ;;  %v2498_v7 = vld [vmem:[%s2422_s23 + $0x40] sm:$0xf] }
  0x21   : > { %v434_v41 = vor.u32 %v433_v33, %v430_v24  ;;  %v505_v44 = vrot.slane %v503_v36, 5  ;;  %v509_v45 = vshll.u32 %v2458_v31, 16  ;;  %v444_v48 = vor.u32 %v443_v39, %v439_v34  ;;  %v414_v11 = vld [vmem:[%s2422_s23 + $0x44] sm:$0x1]  ;;  %v2281_v13 = vld [vmem:[%s2934_s3 + $0x8] sm:$0xff]   ;;  %s1904_s19 = sshll.u32 %s2424_s24, 2 }
  0x22   : > { %v488_v46 = vsel %vm2462_vm2, %v483_v37, %v487_v20  ;;  %v498_v47 = vsel %vm2462_vm2, %v493_v38, %v497_v23  ;;  %v513_v49 = vshrl.u32 %v2458_v31, 16  ;;  %v519_v56 = vshll.u32 %v408_v42, 16  ;;  %v2511_v20 = vld [vmem:[%s2935_s4] sm:$0xff]   ;;  %v2523_v26 = vld [vmem:[%s2422_s23 + $0x54] sm:$0xf]  ;;  %2162 = vmatprep.subr.bf16.mxu1 %v2281_v13  ;;  %s2789_s20 = scalar_lea.vmem %s2938_s7, %s1904_s19 }
  0x23   : > { %v2480_v50 = vcombine.low %v488_v46, %v498_v47  ;;  %v435_v51 = vrot.slane %v434_v41, 4  ;;  %v506_v52 = vor.u32 %v505_v44, %v502_v43  ;;  %v511_v53 = vrot.slane %v509_v45, 5  ;;  %v2516_v21 = vld [vmem:[%s2936_s5] sm:$0xff]   ;;  %v2532_v33 = vld [vmem:[%s2422_s23 + $0x58] sm:$0xf]  ;;  %2163 = vmatpush3.bf16.msra.mxu1 %v2281_v13  ;;  %2180 = vmatprep.subr.bf16.mxu0 %v2511_v20 }
  0x24   : > { %v445_v54 = vrot.slane %v444_v48, 4  ;;  %v515_v55 = vrot.slane %v513_v49, 4  ;;  %v452_v58 = vshrl.u32 %v2427_v2, 16  ;;  %v455_v61 = vshll.u32 %v2427_v2, 16  ;;  %2200 = vmatprep.subr.bf16.mxu1 %v2516_v21  ;;  %v420_v44 = vld [vmem:[%s2422_s23 + $0x5c] sm:$0x1] }
  0x25   : > { %944 = vrot.lane.b32.xlu1 %v2480_v50, %s2328_s9  ;;  %v440_v59 = vsel %vm2462_vm2, %v435_v51, %v439_v34  ;;  %v507_v60 = vrot.slane %v506_v52, 4  ;;  %v461_v62 = vshll.u32 %v2430_v3, 16  ;;  %v521_v5 = vrot.slane %v519_v56, 5  ;;  %v2547_v47 = vld [vmem:[%s2422_s23 + $0x30] sm:$0xf] }
  0x26   : > { %v450_v0 = vsel %vm2462_vm2, %v445_v54, %v449_v40  ;;  %v516_v1 = vor.u32 %v515_v55, %v511_v53  ;;  %v454_v6 = vrot.slane %v452_v58, 4  ;;  %v457_v10 = vrot.slane %v455_v61, 5 }
  0x27   : > { %v1939_v8 = vcombine.low %v440_v59, %v450_v0  ;;  %v512_v9 = vsel %vm2462_vm2, %v507_v60, %v511_v53  ;;  %v463_v2 = vrot.slane %v461_v62, 5  ;;  %v465_v16 = vshrl.u32 %v2430_v3, 16  ;;  %v2553_v60 = vld [vmem:[%s2422_s23 + $0x34] sm:$0xf] }
  0x28   : > { %v517_v15 = vrot.slane %v516_v1, 4  ;;  %v471_v18 = vshll.u32 %v402_v57, 16  ;;  %v548_v19 = vshrl.u32 %v2491_v63, 16  ;;  %v458_v23 = vor.u32 %v457_v10, %v454_v6  ;;  %v411_v6 = vld [vmem:[%s2422_s23 + $0x38] sm:$0x1] }
  0x29   : > { %940 = vrot.lane.b32.xlu0 %v1939_v8, %s2328_s9  ;;  %v551_v24 = vshll.u32 %v2491_v63, 16  ;;  %v557_v3 = vshll.u32 %v2498_v7, 16  ;;  %v561_v25 = vshrl.u32 %v2498_v7, 16  ;;  %v467_v28 = vrot.slane %v465_v16, 4  ;;  %v2560_v8 = vld [vmem:[%s2422_s23 + $0x48] sm:$0xf] }
  0x2a   : > { %v522_v27 = vsel %vm2462_vm2, %v517_v15, %v521_v5  ;;  %v473_v29 = vrot.slane %v471_v18, 5  ;;  %v550_v30 = vrot.slane %v548_v19, 4  ;;  %v459_v35 = vrot.slane %v458_v23, 4 }
  0x2b   : > { %v2535_v34 = vcombine.low %v512_v9, %v522_v27  ;;  %v553_v36 = vrot.slane %v551_v24, 5  ;;  %v559_v37 = vrot.slane %v557_v3, 5  ;;  %v468_v38 = vor.u32 %v467_v28, %v463_v2  ;;  %v2572_v3 = vld [vmem:[%s2422_s23 + $0x4c] sm:$0xf] }
  0x2c   : > { %v563_v39 = vrot.slane %v561_v25, 4  ;;  %v567_v40 = vshll.u32 %v414_v11, 16  ;;  %v596_v41 = vshrl.u32 %v2523_v26, 16  ;;  %v464_v42 = vsel %vm2462_vm2, %v459_v35, %v463_v2 }
  0x2d   : > { %946 = vrot.lane.b32.xlu1 %v2535_v34, %s2328_s9  ;;  %v554_v43 = vor.u32 %v553_v36, %v550_v30  ;;  %v599_v45 = vshll.u32 %v2523_v26, 16  ;;  %v605_v46 = vshll.u32 %v2532_v33, 16  ;;  %v469_v48 = vrot.slane %v468_v38, 4  ;;  %v417_v30 = vld [vmem:[%s2422_s23 + $0x50] sm:$0x1]  ;;  %s2330_s23 = smov 48  }
  0x2e   : > { %v564_v49 = vor.u32 %v563_v39, %v559_v37  ;;  %v569_v51 = vrot.slane %v567_v40, 5  ;;  %v598_v52 = vrot.slane %v596_v41, 4  ;;  %v609_v56 = vshrl.u32 %v2532_v33, 16 }
  0x2f   : > { %v555_v53 = vrot.slane %v554_v43, 4  ;;  %v601_v54 = vrot.slane %v599_v45, 5  ;;  %v607_v55 = vrot.slane %v605_v46, 5  ;;  %v474_v57 = vsel %vm2462_vm2, %v469_v48, %v473_v29 }
  0x30   : > { %v565_v58 = vrot.slane %v564_v49, 4  ;;  %v615_v59 = vshll.u32 %v420_v44, 16  ;;  %v524_v61 = vshrl.u32 %v2547_v47, 16  ;;  %v1940_v62 = vcombine.low %v464_v42, %v474_v57 }
  0x31   : > { %v560_v0 = vsel %vm2462_vm2, %v555_v53, %v559_v37  ;;  %v602_v1 = vor.u32 %v601_v54, %v598_v52  ;;  %v611_v5 = vrot.slane %v609_v56, 4  ;;  %v527_v11 = vshll.u32 %v2547_v47, 16  ;;  %v2592_v53 = vld [vmem:[%s382_s21] sm:$0xf]  ;;  %v2598_v56 = vld [vmem:[%s382_s21 + $0x4] sm:$0xf] }
  0x32   : > { %v570_v9 = vsel %vm2462_vm2, %v565_v58, %v569_v51  ;;  %v617_v10 = vrot.slane %v615_v59, 5  ;;  %v526_v2 = vrot.slane %v524_v61, 4  ;;  %942 = vrot.lane.b32.xlu0 %v1940_v62, %s2328_s9  ;;  %v533_v18 = vshll.u32 %v2553_v60, 16 }
  0x33   : > { %v2566_v13 = vcombine.low %v560_v0, %v570_v9  ;;  %v603_v15 = vrot.slane %v602_v1, 4  ;;  %v612_v16 = vor.u32 %v611_v5, %v607_v55  ;;  %v529_v19 = vrot.slane %v527_v11, 5  ;;  %v423_v5 = vld [vmem:[%s382_s21 + $0x8] sm:$0x1] }
  0x34   : > { %v537_v23 = vshrl.u32 %v2553_v60, 16  ;;  %v543_v24 = vshll.u32 %v411_v6, 16  ;;  %v572_v25 = vshrl.u32 %v2560_v8, 16  ;;  %v535_v29 = vrot.slane %v533_v18, 5 }
  0x35   : > { %950 = vrot.lane.b32.xlu1 %v2566_v13, %s2328_s9  ;;  %v608_v27 = vsel %vm2462_vm2, %v603_v15, %v607_v55  ;;  %v613_v28 = vrot.slane %v612_v16, 4  ;;  %v575_v35 = vshll.u32 %v2560_v8, 16  ;;  %v530_v36 = vor.u32 %v529_v19, %v526_v2 }
  0x36   : > { %v539_v37 = vrot.slane %v537_v23, 4  ;;  %v545_v38 = vrot.slane %v543_v24, 5  ;;  %v574_v39 = vrot.slane %v572_v25, 4  ;;  %1460 = vrot.lane.b32.xlu0 %v2434_v4, %s2329_s22  ;;  %v581_v42 = vshll.u32 %v2572_v3, 16 }
  0x37   : > { %v618_v40 = vsel %vm2462_vm2, %v613_v28, %v617_v10  ;;  %v577_v41 = vrot.slane %v575_v35, 5  ;;  %v585_v43 = vshrl.u32 %v2572_v3, 16  ;;  %v531_v45 = vrot.slane %v530_v36, 4 }
  0x38   : > { %v2590_v44 = vcombine.low %v608_v27, %v618_v40  ;;  %v540_v46 = vor.u32 %v539_v37, %v535_v29  ;;  %v591_v48 = vshll.u32 %v417_v30, 16  ;;  %v583_v51 = vrot.slane %v581_v42, 5  ;;  %v2284_v37 = vld [vmem:[%s2936_s5 + $0x8] sm:$0xff]  }
  0x39   : > { %v578_v49 = vor.u32 %v577_v41, %v574_v39  ;;  %v587_v52 = vrot.slane %v585_v43, 4  ;;  %v536_v54 = vsel %vm2462_vm2, %v531_v45, %v535_v29  ;;  %v620_v0 = vshrl.u32 %v2592_v53, 16  ;;  %v2286_v41 = vld [vmem:[%s2936_s5 + $0x10] sm:$0xff]  }
  0x3a   : > { %954 = vrot.lane.b32.xlu1 %v2590_v44, %s2328_s9  ;;  %v541_v55 = vrot.slane %v540_v46, 4  ;;  %1462 = vrot.lane.b32.xlu0 %v2449_v17, %s2329_s22  ;;  %v593_v59 = vrot.slane %v591_v48, 5  ;;  %v623_v1 = vshll.u32 %v2592_v53, 16  ;;  %v629_v2 = vshll.u32 %v2598_v56, 16 }
  0x3b   : > { %v579_v57 = vrot.slane %v578_v49, 4  ;;  %v588_v58 = vor.u32 %v587_v52, %v583_v51  ;;  %v622_v11 = vrot.slane %v620_v0, 4  ;;  %v633_v16 = vshrl.u32 %v2598_v56, 16 }
  0x3c   : > { %v546_v61 = vsel %vm2462_vm2, %v541_v55, %v545_v38  ;;  %v625_v15 = vrot.slane %v623_v1, 5  ;;  %v631_v19 = vrot.slane %v629_v2, 5  ;;  %v639_v23 = vshll.u32 %v423_v5, 16 }
  0x3d   : > { %v1943_v6 = vcombine.low %v536_v54, %v546_v61  ;;  %v584_v9 = vsel %vm2462_vm2, %v579_v57, %v583_v51  ;;  %v589_v10 = vrot.slane %v588_v58, 4  ;;  %v1906_v24 = vcombine.low %v2440_v12, %v2445_v14 }
  0x3e   : > { %1479 = vrot.lane.b32.xlu1 %v1940_v62, %s2330_s23  ;;  %v635_v27 = vrot.slane %v633_v16, 4  ;;  %v626_v28 = vor.u32 %v625_v15, %v622_v11  ;;  %v2285_v62 = vld [vmem:[%s2935_s4 + $0x8] sm:$0xff]   ;;  %v2624_v29 = vcombine.low %v2452_v22, %v2458_v31  ;;  %v641_v36 = vrot.slane %v639_v23, 5 }
  0x3f   : > { %948 = vrot.lane.b32.xlu0 %v1943_v6, %s2328_s9  ;;  %v594_v18 = vsel %vm2462_vm2, %v589_v10, %v593_v59  ;;  %2144 = vmatprep.mubr.msk.bf16.mxu0 %vm698_vm3, %v1906_v24  ;;  %v2655_v32 = vcombine.low %v2491_v63, %v2498_v7  ;;  %v2677_v63 = vcombine.low %v2523_v26, %v2532_v33 }
  0x40   : > { %v1945_v25 = vcombine.low %v584_v9, %v594_v18  ;;  %v627_v30 = vrot.slane %v626_v28, 4  ;;  %v636_v35 = vor.u32 %v635_v27, %v631_v19  ;;  %2145 = vmatmul.mubr.msk.bf16.vlgmr.msra.gmra.mrb[0].mxu0 %vm698_vm3, %v2434_v4  ;;  %v1973_v7 = vcombine.low %v2592_v53, %v2598_v56 }
  0x41   : > { %2148 = vmatprep.mubr.msk.bf16.mxu0 %vm698_vm3, %v2449_v17  ;;  %2181 = vmatpush3.bf16.msra.mxu0 %v2511_v20  ;;  %v2661_v20 = vcombine.low %v2560_v8, %v2572_v3 }
  0x42   : > { %1481 = vrot.lane.b32.xlu1 %v2480_v50, %s2330_s23  ;;  %v632_v12 = vsel %vm2462_vm2, %v627_v30, %v631_v19  ;;  %v637_v14 = vrot.slane %v636_v35, 4  ;;  %2182 = vmatprep.subr.bf16.mxu0 %v2285_v62  ;;  %v2642_v50 = vcombine.low %v2547_v47, %v2553_v60 }
  0x43   : > { %952 = vrot.lane.b32.xlu0 %v1945_v25, %s2328_s9 }
  0x44   : > { %v642_v22 = vsel %vm2462_vm2, %v637_v14, %v641_v36 }
  0x45   : > { %v2000_v31 = vcombine.low %v632_v12, %v642_v22  ;;  %2183 = vmatpush3.bf16.msra.mxu0 %v2285_v62 }
  0x46   : > { %1207 = vrot.lane.b32.xlu1 %v2624_v29, %s2328_s9 }
  0x47   : > { %1205 = vrot.lane.b32.xlu0 %v2449_v17, %s2328_s9 }
  0x48   : > { %2149 = vmatmul.mubr.msk.bf16.gmra.mrb[4].mxu0 %vm698_vm3, %v2624_v29 }
  0x49   : > { %2152 = vmatprep.mubr.msk.bf16.mxu0 %vm698_vm3, %v2642_v50 }
  0x4a   : > { %1483 = vrot.lane.b32.xlu1 %v2535_v34, %s2330_s23 }
  0x4b   : > { %1464 = vrot.lane.b32.xlu0 %v2624_v29, %s2329_s22 }
  0x4e   : > { %1485 = vrot.lane.b32.xlu1 %v1943_v6, %s2330_s23 }
  0x4f   : > { %1466 = vrot.lane.b32.xlu0 %v2642_v50, %s2329_s22 }
  0x50   : > { %2153 = vmatmul.mubr.msk.bf16.gmra.mrb[8].mxu0 %vm698_vm3, %v2655_v32 }
  0x51   : > { %2156 = vmatprep.mubr.msk.bf16.mxu0 %vm698_vm3, %v2661_v20 }
  0x52   : > { %1211 = vrot.lane.b32.xlu1 %v2655_v32, %s2328_s9 }
  0x53   : > { %1209 = vrot.lane.b32.xlu0 %v2642_v50, %s2328_s9 }
  0x56   : > { %1487 = vrot.lane.b32.xlu1 %v2566_v13, %s2330_s23 }
  0x57   : > { %1468 = vrot.lane.b32.xlu0 %v2655_v32, %s2329_s22 }
  0x58   : > { %2157 = vmatmul.mubr.msk.bf16.gmra.mrb[12].mxu0 %vm698_vm3, %v2677_v63 }
  0x5a   : > { %1489 = vrot.lane.b32.xlu1 %v1945_v25, %s2330_s23 }
  0x5b   : > { %1470 = vrot.lane.b32.xlu0 %v2661_v20, %s2329_s22 }
  0x5e   : > { %1215 = vrot.lane.b32.xlu1 %v2677_v63, %s2328_s9 }
  0x5f   : > { %1213 = vrot.lane.b32.xlu0 %v2661_v20, %s2328_s9 }
  0x62   : > { %1491 = vrot.lane.b32.xlu1 %v2590_v44, %s2330_s23  ;;  %v2287_v44 = vld [vmem:[%s2936_s5 + $0x18] sm:$0xff]  }
  0x63   : > { %1472 = vrot.lane.b32.xlu0 %v2677_v63, %s2329_s22 }
  0x66   : > { %1493 = vrot.lane.b32.xlu1 %v2000_v31, %s2330_s23 }
  0x67   : > { %1474 = vrot.lane.b32.xlu0 %v1973_v7, %s2329_s22 }
  0x6b   : > { %1217 = vrot.lane.b32.xlu0 %v1973_v7, %s2328_s9 }
  0x8d   : > { %v1204_v26 = vpop.permute.xlu1 %1203 }
  0x8e   : > { %v1220_v33 = vsel %vm698_vm3, %v1906_v24, %v1204_v26 }
  0x8f   : > { %2184 = vmatprep.mubr.msk.bf16.mxu0 %vm988_vm4, %v1220_v33 }
  0x97   : > { %v945_v34 = vpop.permute.xlu1 %944 }
  0x98   : > { %v961_v13 = vsel %vm698_vm3, %v2449_v17, %v945_v34 }
  0x9b   : > { %v941_v47 = vpop.permute.xlu0 %940 }
  0x9c   : > { %v957_v60 = vsel %vm698_vm3, %v1906_v24, %v941_v47 }
  0x9d   : > { %2164 = vmatprep.mubr.msk.bf16.mxu1 %vm988_vm4, %v957_v60 }
  0x9f   : > { %v947_v8 = vpop.permute.xlu1 %946 }
  0xa0   : > { %v963_v45 = vsel %vm698_vm3, %v2624_v29, %v947_v8 }
  0xa4   : > { %v943_v3 = vpop.permute.xlu0 %942 }
  0xa5   : > { %v959_v38 = vsel %vm698_vm3, %v2434_v4, %v943_v3 }
  0xa6   : > { %2165 = vmatmul.mubr.msk.bf16.vlgmr.msra.gmra.mrb[0].mxu1 %vm988_vm4, %v959_v38 }
  0xa7   : > { %v951_v39 = vpop.permute.xlu1 %950  ;;  %2201 = vmatpush3.bf16.msra.mxu1 %v2516_v21  ;;  %2168 = vmatprep.mubr.msk.bf16.mxu1 %vm988_vm4, %v961_v13 }
  0xa8   : > { %v1461_v40 = vpop.permute.xlu0 %1460  ;;  %2202 = vmatprep.subr.bf16.mxu1 %v2284_v37  ;;  %v967_v52 = vsel %vm698_vm3, %v2655_v32, %v951_v39 }
  0xa9   : > { %v1496_v61 = vsel %vm988_vm4, %v957_v60, %v1461_v40  ;;  %v2780_v60 = vld [vmem:[%s2937_s6] ss:$0 sm:$0xff] }
  0xab   : > { %2203 = vmatpush3.bf16.msra.mxu1 %v2284_v37 }
  0xac   : > { %v955_v42 = vpop.permute.xlu1 %954  ;;  %v1463_v43 = vpop.permute.xlu0 %1462  ;;  %2204 = vmatprep.subr.bf16.mxu1 %v2286_v41 }
  0xad   : > { %v971_v0 = vsel %vm698_vm3, %v2677_v63, %v955_v42  ;;  %v1498_v9 = vsel %vm988_vm4, %v959_v38, %v1463_v43 }
  0xae   : > { %2169 = vmatmul.mubr.msk.bf16.gmra.mrb[4].mxu1 %vm988_vm4, %v963_v45 }
  0xaf   : > { %2205 = vmatpush3.bf16.msra.mxu1 %v2286_v41 }
  0xb0   : > { %v1480_v21 = vpop.permute.xlu1 %1479  ;;  %2206 = vmatprep.subr.bf16.mxu1 %v2287_v44 }
  0xb1   : > { %v949_v46 = vpop.permute.xlu0 %948  ;;  %v1513_v1 = vsel %vm1511_vm5, %v1496_v61, %v1480_v21 }
  0xb2   : > { %v965_v48 = vsel %vm698_vm3, %v2642_v50, %v949_v46 }
  0xb3   : > { %2172 = vmatprep.mubr.msk.bf16.mxu1 %vm988_vm4, %v965_v48  ;;  %2207 = vmatpush3.bf16.msra.mxu1 %v2287_v44 }
  0xb4   : > { %v1482_v49 = vpop.permute.xlu1 %1481 }
  0xb5   : > { %v953_v51 = vpop.permute.xlu0 %952  ;;  %v1515_v11 = vsel %vm1511_vm5, %v1498_v9, %v1482_v49 }
  0xb6   : > { %v969_v53 = vsel %vm698_vm3, %v2661_v20, %v953_v51  ;;  %2173 = vmatmul.mubr.msk.bf16.gmra.mrb[8].mxu1 %vm988_vm4, %v967_v52 }
  0xb7   : > { %2176 = vmatprep.mubr.msk.bf16.mxu1 %vm988_vm4, %v969_v53 }
  0xb8   : > { %v1208_v54 = vpop.permute.xlu1 %1207 }
  0xb9   : > { %v1206_v55 = vpop.permute.xlu0 %1205  ;;  %v1224_v56 = vsel %vm698_vm3, %v2449_v17, %v1208_v54 }
  0xba   : > { %v1222_v57 = vsel %vm698_vm3, %v2434_v4, %v1206_v55 }
  0xbb   : > { %2185 = vmatmul.mubr.msk.bf16.vlgmr.msra.gmra.mrb[16].mxu0 %vm988_vm4, %v1222_v57 }
  0xbc   : > { %v1484_v58 = vpop.permute.xlu1 %1483  ;;  %2188 = vmatprep.mubr.msk.bf16.mxu0 %vm988_vm4, %v1224_v56 }
  0xbd   : > { %v1465_v59 = vpop.permute.xlu0 %1464 }
  0xbe   : > { %2177 = vmatmul.mubr.msk.bf16.gmra.mrb[12].mxu1 %vm988_vm4, %v971_v0  ;;  %v1500_v5 = vsel %vm988_vm4, %v961_v13, %v1465_v59 }
  0xbf   : > { %2208 = vmatprep.mubr.msk.bf16.mxu1 %vm1560_vm6, %v1513_v1  ;;  %v1517_v16 = vsel %vm1511_vm5, %v1500_v5, %v1484_v58 }
  0xc0   : > { %v1486_v4 = vpop.permute.xlu1 %1485 }
  0xc1   : > { %v1467_v17 = vpop.permute.xlu0 %1466 }
  0xc2   : > { %v1502_v23 = vsel %vm988_vm4, %v963_v45, %v1467_v17 }
  0xc3   : > { %v1519_v28 = vsel %vm1511_vm5, %v1502_v23, %v1486_v4 }
  0xc4   : > { %v1212_v6 = vpop.permute.xlu1 %1211 }
  0xc5   : > { %v1210_v10 = vpop.permute.xlu0 %1209  ;;  %v1228_v2 = vsel %vm698_vm3, %v2642_v50, %v1212_v6 }
  0xc6   : > { %v1226_v15 = vsel %vm698_vm3, %v2624_v29, %v1210_v10  ;;  %2209 = vmatmul.mubr.msk.bf16.vlgmr.msra.gmra.mrb[16].mxu1 %vm1560_vm6, %v1515_v11 }
  0xc7   : > { %2189 = vmatmul.mubr.msk.bf16.gmra.mrb[20].mxu0 %vm988_vm4, %v1226_v15  ;;  %2212 = vmatprep.mubr.msk.bf16.mxu1 %vm1560_vm6, %v1517_v16 }
  0xc8   : > { %v1488_v18 = vpop.permute.xlu1 %1487  ;;  %2192 = vmatprep.mubr.msk.bf16.mxu0 %vm988_vm4, %v1228_v2 }
  0xc9   : > { %v1469_v19 = vpop.permute.xlu0 %1468 }
  0xca   : > { %v1504_v24 = vsel %vm988_vm4, %v965_v48, %v1469_v19 }
  0xcb   : > { %v1521_v62 = vsel %vm1511_vm5, %v1504_v24, %v1488_v18 }
  0xcc   : > { %v1490_v25 = vpop.permute.xlu1 %1489 }
  0xcd   : > { %v1471_v27 = vpop.permute.xlu0 %1470 }
  0xce   : > { %2213 = vmatmul.mubr.msk.bf16.gmra.mrb[20].mxu1 %vm1560_vm6, %v1519_v28  ;;  %v1506_v12 = vsel %vm988_vm4, %v967_v52, %v1471_v27 }
  0xcf   : > { %2216 = vmatprep.mubr.msk.bf16.mxu1 %vm1560_vm6, %v1521_v62  ;;  %v1523_v31 = vsel %vm1511_vm5, %v1506_v12, %v1490_v25 }
  0xd0   : > { %v1216_v29 = vpop.permute.xlu1 %1215 }
  0xd1   : > { %v1214_v30 = vpop.permute.xlu0 %1213  ;;  %v1232_v35 = vsel %vm698_vm3, %v2661_v20, %v1216_v29 }
  0xd2   : > { %v1230_v36 = vsel %vm698_vm3, %v2655_v32, %v1214_v30 }
  0xd3   : > { %2193 = vmatmul.mubr.msk.bf16.gmra.mrb[24].mxu0 %vm988_vm4, %v1230_v36 }
  0xd4   : > { %v1492_v14 = vpop.permute.xlu1 %1491  ;;  %2196 = vmatprep.mubr.msk.bf16.mxu0 %vm988_vm4, %v1232_v35 }
  0xd5   : > { %v1473_v22 = vpop.permute.xlu0 %1472 }
  0xd6   : > { %v1508_v50 = vsel %vm988_vm4, %v969_v53, %v1473_v22  ;;  %2217 = vmatmul.mubr.msk.bf16.gmra.mrb[24].mxu1 %vm1560_vm6, %v1523_v31 }
  0xd7   : > { %v1525_v7 = vsel %vm1511_vm5, %v1508_v50, %v1492_v14 }
  0xd8   : > { %2220 = vmatprep.mubr.msk.bf16.mxu1 %vm1560_vm6, %v1525_v7  ;;  %v1494_v26 = vpop.permute.xlu1 %1493 }
  0xd9   : > { %v1475_v32 = vpop.permute.xlu0 %1474 }
  0xda   : > { %v1510_v20 = vsel %vm988_vm4, %v971_v0, %v1475_v32 }
  0xdb   : > { %v1527_v34 = vsel %vm1511_vm5, %v1510_v20, %v1494_v26 }
  0xdd   : > { %v1218_v33 = vpop.permute.xlu0 %1217 }
  0xde   : > { %v1234_v47 = vsel %vm698_vm3, %v2677_v63, %v1218_v33  ;;  %2221 = vmatmul.mubr.msk.bf16.gmra.mrb[28].mxu1 %vm1560_vm6, %v1527_v34 }
  0xdf   : > { %2197 = vmatmul.mubr.msk.bf16.gmra.mrb[28].mxu0 %vm988_vm4, %v1234_v47 }
 0x113   : > { %v2146_v8 = vpop.f32.mrb[0].mxu0 }
 0x114   : > { %v766_v13 = vadd.f32 %v2146_v8, %v2780_v60  ;;  %v757_v3 = vpop.f32.mrb[1].mxu0 }
 0x115   : > { %v758_v37 = vadd.f32 %v2780_v60, %v757_v3  ;;  %v2147_v38 = vpop.f32.mrb[2].mxu0 }
 0x116   : > { %v822_v39 = vmax.f32 %v766_v13, 0.0  ;;  %v769_v63 = vadd.f32 %v2147_v38, %v2780_v60  ;;  %v760_v40 = vpop.f32.mrb[3].mxu0 }
 0x117   : > { %v820_v41 = vmax.f32 %v758_v37, 0.0  ;;  %v761_v42 = vadd.f32 %v2780_v60, %v760_v40 }
 0x118   : > { %v2039_v43 = vpack.c.bf16 %v822_v39, %v822_v39  ;;  %v823_v44 = vmax.f32 %v769_v63, 0.0 }
 0x119   : > { %v2037_v45 = vpack.c.bf16 %v820_v41, %v820_v41  ;;  %v821_v21 = vmax.f32 %v761_v42, 0.0 }
 0x11a   : > { %902 = vst [vmem:[%s2789_s20 + $0x20] sm:$0xf] %v2039_v43  ;;  %v2040_v46 = vpack.c.bf16 %v823_v44, %v823_v44 }
 0x11b   : > { %900 = vst [vmem:[%s2789_s20] sm:$0xf] %v2037_v45  ;;  %v2038_v48 = vpack.c.bf16 %v821_v21, %v821_v21  ;;  %v2150_v49 = vpop.f32.mrb[4].mxu0 }
 0x11c   : > { %903 = vst [vmem:[%s2789_s20 + $0x30] sm:$0xf] %v2040_v46  ;;  %v782_v51 = vadd.f32 %v2150_v49, %v2780_v60  ;;  %v773_v52 = vpop.f32.mrb[5].mxu0 }
 0x11d   : > { %901 = vst [vmem:[%s2789_s20 + $0x10] sm:$0xf] %v2038_v48  ;;  %v774_v53 = vadd.f32 %v2780_v60, %v773_v52  ;;  %v2151_v54 = vpop.f32.mrb[6].mxu0 }
 0x11e   : > { %v826_v55 = vmax.f32 %v782_v51, 0.0  ;;  %v785_v56 = vadd.f32 %v2151_v54, %v2780_v60  ;;  %v776_v57 = vpop.f32.mrb[7].mxu0 }
 0x11f   : > { %v824_v58 = vmax.f32 %v774_v53, 0.0  ;;  %v777_v59 = vadd.f32 %v2780_v60, %v776_v57 }
 0x120   : > { %v2043_v61 = vpack.c.bf16 %v826_v55, %v826_v55  ;;  %v827_v0 = vmax.f32 %v785_v56, 0.0 }
 0x121   : > { %v2041_v1 = vpack.c.bf16 %v824_v58, %v824_v58  ;;  %v825_v4 = vmax.f32 %v777_v59, 0.0 }
 0x122   : > { %906 = vst [vmem:[%s2789_s20 + $0x60] sm:$0xf] %v2043_v61  ;;  %v2044_v17 = vpack.c.bf16 %v827_v0, %v827_v0 }
 0x123   : > { %904 = vst [vmem:[%s2789_s20 + $0x40] sm:$0xf] %v2041_v1  ;;  %v2042_v5 = vpack.c.bf16 %v825_v4, %v825_v4  ;;  %v2154_v6 = vpop.f32.mrb[8].mxu0 }
 0x124   : > { %907 = vst [vmem:[%s2789_s20 + $0x70] sm:$0xf] %v2044_v17  ;;  %v798_v9 = vadd.f32 %v2154_v6, %v2780_v60  ;;  %v789_v10 = vpop.f32.mrb[9].mxu0 }
 0x125   : > { %905 = vst [vmem:[%s2789_s20 + $0x50] sm:$0xf] %v2042_v5  ;;  %v790_v2 = vadd.f32 %v2780_v60, %v789_v10  ;;  %v2155_v11 = vpop.f32.mrb[10].mxu0 }
 0x126   : > { %v830_v15 = vmax.f32 %v798_v9, 0.0  ;;  %v801_v16 = vadd.f32 %v2155_v11, %v2780_v60  ;;  %v792_v18 = vpop.f32.mrb[11].mxu0 }
 0x127   : > { %v828_v19 = vmax.f32 %v790_v2, 0.0  ;;  %v793_v23 = vadd.f32 %v2780_v60, %v792_v18 }
 0x128   : > { %v2047_v24 = vpack.c.bf16 %v830_v15, %v830_v15  ;;  %v831_v25 = vmax.f32 %v801_v16, 0.0 }
 0x129   : > { %v2045_v27 = vpack.c.bf16 %v828_v19, %v828_v19  ;;  %v829_v28 = vmax.f32 %v793_v23, 0.0 }
 0x12a   : > { %910 = vst [vmem:[%s2789_s20 + $0xa0] sm:$0xf] %v2047_v24  ;;  %v2048_v62 = vpack.c.bf16 %v831_v25, %v831_v25 }
 0x12b   : > { %908 = vst [vmem:[%s2789_s20 + $0x80] sm:$0xf] %v2045_v27  ;;  %v2046_v29 = vpack.c.bf16 %v829_v28, %v829_v28  ;;  %v2158_v30 = vpop.f32.mrb[12].mxu0 }
 0x12c   : > { %911 = vst [vmem:[%s2789_s20 + $0xb0] sm:$0xf] %v2048_v62  ;;  %v814_v35 = vadd.f32 %v2158_v30, %v2780_v60  ;;  %v805_v36 = vpop.f32.mrb[13].mxu0 }
 0x12d   : > { %909 = vst [vmem:[%s2789_s20 + $0x90] sm:$0xf] %v2046_v29  ;;  %v806_v12 = vadd.f32 %v2780_v60, %v805_v36  ;;  %v2159_v14 = vpop.f32.mrb[14].mxu0 }
 0x12e   : > { %v834_v22 = vmax.f32 %v814_v35, 0.0  ;;  %v817_v31 = vadd.f32 %v2159_v14, %v2780_v60  ;;  %v808_v50 = vpop.f32.mrb[15].mxu0 }
 0x12f   : > { %v832_v7 = vmax.f32 %v806_v12, 0.0  ;;  %v809_v32 = vadd.f32 %v2780_v60, %v808_v50 }
 0x130   : > { %v2051_v20 = vpack.c.bf16 %v834_v22, %v834_v22  ;;  %v835_v26 = vmax.f32 %v817_v31, 0.0 }
 0x131   : > { %v2049_v33 = vpack.c.bf16 %v832_v7, %v832_v7  ;;  %v833_v34 = vmax.f32 %v809_v32, 0.0 }
 0x132   : > { %914 = vst [vmem:[%s2789_s20 + $0xe0] sm:$0xf] %v2051_v20  ;;  %v2052_v47 = vpack.c.bf16 %v835_v26, %v835_v26 }
 0x133   : > { %912 = vst [vmem:[%s2789_s20 + $0xc0] sm:$0xf] %v2049_v33  ;;  %v2050_v8 = vpack.c.bf16 %v833_v34, %v833_v34 }
 0x134   : > { %915 = vst [vmem:[%s2789_s20 + $0xf0] sm:$0xf] %v2052_v47 }
 0x135   : > { %913 = vst [vmem:[%s2789_s20 + $0xd0] sm:$0xf] %v2050_v8 }
 0x179   : > { %v2166_v13 = vpop.f32.mrb[0].mxu1 }
 0x17a   : > { %v1048_v3 = vadd.f32 %v2166_v13, %v2780_v60  ;;  %v1039_v37 = vpop.f32.mrb[1].mxu1 }
 0x17b   : > { %v1040_v38 = vadd.f32 %v2780_v60, %v1039_v37  ;;  %v2167_v39 = vpop.f32.mrb[2].mxu1 }
 0x17c   : > { %v1104_v63 = vmax.f32 %v1048_v3, 0.0  ;;  %v1051_v40 = vadd.f32 %v2167_v39, %v2780_v60  ;;  %v1042_v41 = vpop.f32.mrb[3].mxu1 }
 0x17d   : > { %v1102_v42 = vmax.f32 %v1040_v38, 0.0  ;;  %v1043_v43 = vadd.f32 %v2780_v60, %v1042_v41 }
 0x17e   : > { %v2055_v44 = vpack.c.bf16 %v1104_v63, %v1104_v63  ;;  %v1105_v45 = vmax.f32 %v1051_v40, 0.0 }
 0x17f   : > { %v2053_v21 = vpack.c.bf16 %v1102_v42, %v1102_v42  ;;  %v1103_v46 = vmax.f32 %v1043_v43, 0.0 }
 0x180   : > { %1184 = vst [vmem:[%s2789_s20 + $0x24] sm:$0xf] %v2055_v44  ;;  %v2056_v48 = vpack.c.bf16 %v1105_v45, %v1105_v45 }
 0x181   : > { %1182 = vst [vmem:[%s2789_s20 + $0x4] sm:$0xf] %v2053_v21  ;;  %v2054_v49 = vpack.c.bf16 %v1103_v46, %v1103_v46  ;;  %v2170_v51 = vpop.f32.mrb[4].mxu1 }
 0x182   : > { %1185 = vst [vmem:[%s2789_s20 + $0x34] sm:$0xf] %v2056_v48  ;;  %v1064_v52 = vadd.f32 %v2170_v51, %v2780_v60  ;;  %v1055_v53 = vpop.f32.mrb[5].mxu1 }
 0x183   : > { %1183 = vst [vmem:[%s2789_s20 + $0x14] sm:$0xf] %v2054_v49  ;;  %v1056_v54 = vadd.f32 %v2780_v60, %v1055_v53  ;;  %v2171_v55 = vpop.f32.mrb[6].mxu1 }
 0x184   : > { %v1108_v56 = vmax.f32 %v1064_v52, 0.0  ;;  %v1067_v57 = vadd.f32 %v2171_v55, %v2780_v60  ;;  %v1058_v58 = vpop.f32.mrb[7].mxu1 }
 0x185   : > { %v1106_v59 = vmax.f32 %v1056_v54, 0.0  ;;  %v1059_v61 = vadd.f32 %v2780_v60, %v1058_v58 }
 0x186   : > { %v2059_v0 = vpack.c.bf16 %v1108_v56, %v1108_v56  ;;  %v1109_v1 = vmax.f32 %v1067_v57, 0.0 }
 0x187   : > { %v2057_v4 = vpack.c.bf16 %v1106_v59, %v1106_v59  ;;  %v1107_v17 = vmax.f32 %v1059_v61, 0.0 }
 0x188   : > { %1188 = vst [vmem:[%s2789_s20 + $0x64] sm:$0xf] %v2059_v0  ;;  %v2060_v5 = vpack.c.bf16 %v1109_v1, %v1109_v1 }
 0x189   : > { %1186 = vst [vmem:[%s2789_s20 + $0x44] sm:$0xf] %v2057_v4  ;;  %v2058_v6 = vpack.c.bf16 %v1107_v17, %v1107_v17  ;;  %v2174_v9 = vpop.f32.mrb[8].mxu1 }
 0x18a   : > { %1189 = vst [vmem:[%s2789_s20 + $0x74] sm:$0xf] %v2060_v5  ;;  %v1080_v10 = vadd.f32 %v2174_v9, %v2780_v60  ;;  %v1071_v2 = vpop.f32.mrb[9].mxu1 }
 0x18b   : > { %1187 = vst [vmem:[%s2789_s20 + $0x54] sm:$0xf] %v2058_v6  ;;  %v1072_v11 = vadd.f32 %v2780_v60, %v1071_v2  ;;  %v2175_v15 = vpop.f32.mrb[10].mxu1 }
 0x18c   : > { %v1112_v16 = vmax.f32 %v1080_v10, 0.0  ;;  %v1083_v18 = vadd.f32 %v2175_v15, %v2780_v60  ;;  %v1074_v19 = vpop.f32.mrb[11].mxu1 }
 0x18d   : > { %v1110_v23 = vmax.f32 %v1072_v11, 0.0  ;;  %v1075_v24 = vadd.f32 %v2780_v60, %v1074_v19 }
 0x18e   : > { %v2186_v25 = vpop.f32.mrb[16].mxu0  ;;  %v2063_v27 = vpack.c.bf16 %v1112_v16, %v1112_v16  ;;  %v1113_v28 = vmax.f32 %v1083_v18, 0.0 }
 0x18f   : > { %v1310_v62 = vadd.f32 %v2186_v25, %v2780_v60  ;;  %v1301_v29 = vpop.f32.mrb[17].mxu0  ;;  %v2061_v30 = vpack.c.bf16 %v1110_v23, %v1110_v23  ;;  %v1111_v35 = vmax.f32 %v1075_v24, 0.0 }
 0x190   : > { %v1302_v36 = vadd.f32 %v2780_v60, %v1301_v29  ;;  %v2187_v12 = vpop.f32.mrb[18].mxu0  ;;  %1192 = vst [vmem:[%s2789_s20 + $0xa4] sm:$0xf] %v2063_v27  ;;  %v2064_v14 = vpack.c.bf16 %v1113_v28, %v1113_v28 }
 0x191   : > { %v1366_v22 = vmax.f32 %v1310_v62, 0.0  ;;  %v1313_v31 = vadd.f32 %v2187_v12, %v2780_v60  ;;  %v1304_v50 = vpop.f32.mrb[19].mxu0  ;;  %1190 = vst [vmem:[%s2789_s20 + $0x84] sm:$0xf] %v2061_v30  ;;  %v2062_v7 = vpack.c.bf16 %v1111_v35, %v1111_v35  ;;  %v2178_v26 = vpop.f32.mrb[12].mxu1 }
 0x192   : > { %v1364_v32 = vmax.f32 %v1302_v36, 0.0  ;;  %v1305_v20 = vadd.f32 %v2780_v60, %v1304_v50  ;;  %1193 = vst [vmem:[%s2789_s20 + $0xb4] sm:$0xf] %v2064_v14  ;;  %v1096_v47 = vadd.f32 %v2178_v26, %v2780_v60  ;;  %v1087_v8 = vpop.f32.mrb[13].mxu1 }
 0x193   : > { %v2071_v33 = vpack.c.bf16 %v1366_v22, %v1366_v22  ;;  %v1367_v34 = vmax.f32 %v1313_v31, 0.0  ;;  %1191 = vst [vmem:[%s2789_s20 + $0x94] sm:$0xf] %v2062_v7  ;;  %v1088_v37 = vadd.f32 %v2780_v60, %v1087_v8  ;;  %v2179_v38 = vpop.f32.mrb[14].mxu1 }
 0x194   : > { %v2069_v13 = vpack.c.bf16 %v1364_v32, %v1364_v32  ;;  %v1365_v3 = vmax.f32 %v1305_v20, 0.0  ;;  %v1116_v63 = vmax.f32 %v1096_v47, 0.0  ;;  %v1099_v40 = vadd.f32 %v2179_v38, %v2780_v60  ;;  %v1090_v41 = vpop.f32.mrb[15].mxu1 }
 0x195   : > { %1446 = vst [vmem:[%s2789_s20 + $0x28] sm:$0xf] %v2071_v33  ;;  %v2072_v39 = vpack.c.bf16 %v1367_v34, %v1367_v34  ;;  %v1114_v43 = vmax.f32 %v1088_v37, 0.0  ;;  %v1091_v44 = vadd.f32 %v2780_v60, %v1090_v41 }
 0x196   : > { %1444 = vst [vmem:[%s2789_s20 + $0x8] sm:$0xf] %v2069_v13  ;;  %v2070_v42 = vpack.c.bf16 %v1365_v3, %v1365_v3  ;;  %v2067_v45 = vpack.c.bf16 %v1116_v63, %v1116_v63  ;;  %v1117_v21 = vmax.f32 %v1099_v40, 0.0 }
 0x197   : > { %1447 = vst [vmem:[%s2789_s20 + $0x38] sm:$0xf] %v2072_v39  ;;  %v2065_v46 = vpack.c.bf16 %v1114_v43, %v1114_v43  ;;  %v1115_v48 = vmax.f32 %v1091_v44, 0.0 }
 0x198   : > { %1445 = vst [vmem:[%s2789_s20 + $0x18] sm:$0xf] %v2070_v42  ;;  %1196 = vst [vmem:[%s2789_s20 + $0xe4] sm:$0xf] %v2067_v45  ;;  %v2068_v49 = vpack.c.bf16 %v1117_v21, %v1117_v21 }
 0x199   : > { %1194 = vst [vmem:[%s2789_s20 + $0xc4] sm:$0xf] %v2065_v46  ;;  %v2066_v51 = vpack.c.bf16 %v1115_v48, %v1115_v48  ;;  %v2210_v53 = vpop.f32.mrb[16].mxu1 }
 0x19a   : > { %v2190_v52 = vpop.f32.mrb[20].mxu0  ;;  %1197 = vst [vmem:[%s2789_s20 + $0xf4] sm:$0xf] %v2068_v49  ;;  %v1620_v55 = vadd.f32 %v2210_v53, %v2780_v60  ;;  %v1611_v57 = vpop.f32.mrb[17].mxu1 }
 0x19b   : > { %v1326_v54 = vadd.f32 %v2190_v52, %v2780_v60  ;;  %v1317_v56 = vpop.f32.mrb[21].mxu0  ;;  %1195 = vst [vmem:[%s2789_s20 + $0xd4] sm:$0xf] %v2066_v51  ;;  %v1612_v59 = vadd.f32 %v2780_v60, %v1611_v57  ;;  %v2211_v0 = vpop.f32.mrb[18].mxu1 }
 0x19c   : > { %v1318_v58 = vadd.f32 %v2780_v60, %v1317_v56  ;;  %v2191_v61 = vpop.f32.mrb[22].mxu0  ;;  %v1676_v4 = vmax.f32 %v1620_v55, 0.0  ;;  %v1623_v5 = vadd.f32 %v2211_v0, %v2780_v60  ;;  %v1614_v9 = vpop.f32.mrb[19].mxu1 }
 0x19d   : > { %v1370_v1 = vmax.f32 %v1326_v54, 0.0  ;;  %v1329_v17 = vadd.f32 %v2191_v61, %v2780_v60  ;;  %v1320_v6 = vpop.f32.mrb[23].mxu0  ;;  %v1674_v2 = vmax.f32 %v1612_v59, 0.0  ;;  %v1615_v15 = vadd.f32 %v2780_v60, %v1614_v9 }
 0x19e   : > { %v1368_v10 = vmax.f32 %v1318_v58, 0.0  ;;  %v1321_v11 = vadd.f32 %v2780_v60, %v1320_v6  ;;  %v2087_v18 = vpack.c.bf16 %v1676_v4, %v1676_v4  ;;  %v1677_v23 = vmax.f32 %v1623_v5, 0.0 }
 0x19f   : > { %v2075_v16 = vpack.c.bf16 %v1370_v1, %v1370_v1  ;;  %v1371_v19 = vmax.f32 %v1329_v17, 0.0  ;;  %v2085_v25 = vpack.c.bf16 %v1674_v2, %v1674_v2  ;;  %v1675_v28 = vmax.f32 %v1615_v15, 0.0 }
 0x1a0   : > { %v2073_v24 = vpack.c.bf16 %v1368_v10, %v1368_v10  ;;  %v1369_v27 = vmax.f32 %v1321_v11, 0.0  ;;  %1756 = vst [vmem:[%s2789_s20 + $0x2c] sm:$0xf] %v2087_v18  ;;  %v2088_v29 = vpack.c.bf16 %v1677_v23, %v1677_v23 }
 0x1a1   : > { %1450 = vst [vmem:[%s2789_s20 + $0x68] sm:$0xf] %v2075_v16  ;;  %v2076_v62 = vpack.c.bf16 %v1371_v19, %v1371_v19  ;;  %1754 = vst [vmem:[%s2789_s20 + $0xc] sm:$0xf] %v2085_v25  ;;  %v2086_v35 = vpack.c.bf16 %v1675_v28, %v1675_v28  ;;  %v2214_v36 = vpop.f32.mrb[20].mxu1 }
 0x1a2   : > { %1448 = vst [vmem:[%s2789_s20 + $0x48] sm:$0xf] %v2073_v24  ;;  %v2074_v30 = vpack.c.bf16 %v1369_v27, %v1369_v27  ;;  %1757 = vst [vmem:[%s2789_s20 + $0x3c] sm:$0xf] %v2088_v29  ;;  %v1636_v12 = vadd.f32 %v2214_v36, %v2780_v60  ;;  %v1627_v14 = vpop.f32.mrb[21].mxu1 }
 0x1a3   : > { %1451 = vst [vmem:[%s2789_s20 + $0x78] sm:$0xf] %v2076_v62  ;;  %1755 = vst [vmem:[%s2789_s20 + $0x1c] sm:$0xf] %v2086_v35  ;;  %v1628_v22 = vadd.f32 %v2780_v60, %v1627_v14  ;;  %v2215_v31 = vpop.f32.mrb[22].mxu1 }
 0x1a4   : > { %1449 = vst [vmem:[%s2789_s20 + $0x58] sm:$0xf] %v2074_v30  ;;  %v1680_v50 = vmax.f32 %v1636_v12, 0.0  ;;  %v1639_v7 = vadd.f32 %v2215_v31, %v2780_v60  ;;  %v1630_v32 = vpop.f32.mrb[23].mxu1 }
 0x1a5   : > { %v1678_v20 = vmax.f32 %v1628_v22, 0.0  ;;  %v1631_v26 = vadd.f32 %v2780_v60, %v1630_v32 }
 0x1a6   : > { %v2194_v33 = vpop.f32.mrb[24].mxu0  ;;  %v2091_v34 = vpack.c.bf16 %v1680_v50, %v1680_v50  ;;  %v1681_v47 = vmax.f32 %v1639_v7, 0.0 }
 0x1a7   : > { %v1342_v8 = vadd.f32 %v2194_v33, %v2780_v60  ;;  %v1333_v13 = vpop.f32.mrb[25].mxu0  ;;  %v2089_v3 = vpack.c.bf16 %v1678_v20, %v1678_v20  ;;  %v1679_v37 = vmax.f32 %v1631_v26, 0.0 }
 0x1a8   : > { %v1334_v38 = vadd.f32 %v2780_v60, %v1333_v13  ;;  %v2195_v39 = vpop.f32.mrb[26].mxu0  ;;  %1760 = vst [vmem:[%s2789_s20 + $0x6c] sm:$0xf] %v2091_v34  ;;  %v2092_v63 = vpack.c.bf16 %v1681_v47, %v1681_v47 }
 0x1a9   : > { %v1374_v40 = vmax.f32 %v1342_v8, 0.0  ;;  %v1345_v41 = vadd.f32 %v2195_v39, %v2780_v60  ;;  %v1336_v42 = vpop.f32.mrb[27].mxu0  ;;  %1758 = vst [vmem:[%s2789_s20 + $0x4c] sm:$0xf] %v2089_v3  ;;  %v2090_v43 = vpack.c.bf16 %v1679_v37, %v1679_v37  ;;  %v2218_v21 = vpop.f32.mrb[24].mxu1 }
 0x1aa   : > { %v1372_v44 = vmax.f32 %v1334_v38, 0.0  ;;  %v1337_v45 = vadd.f32 %v2780_v60, %v1336_v42  ;;  %1761 = vst [vmem:[%s2789_s20 + $0x7c] sm:$0xf] %v2092_v63  ;;  %v1652_v49 = vadd.f32 %v2218_v21, %v2780_v60  ;;  %v1643_v51 = vpop.f32.mrb[25].mxu1 }
 0x1ab   : > { %v2079_v46 = vpack.c.bf16 %v1374_v40, %v1374_v40  ;;  %v1375_v48 = vmax.f32 %v1345_v41, 0.0  ;;  %1759 = vst [vmem:[%s2789_s20 + $0x5c] sm:$0xf] %v2090_v43  ;;  %v1644_v54 = vadd.f32 %v2780_v60, %v1643_v51  ;;  %v2219_v55 = vpop.f32.mrb[26].mxu1 }
 0x1ac   : > { %v2077_v52 = vpack.c.bf16 %v1372_v44, %v1372_v44  ;;  %v1373_v53 = vmax.f32 %v1337_v45, 0.0  ;;  %v1684_v57 = vmax.f32 %v1652_v49, 0.0  ;;  %v1655_v58 = vadd.f32 %v2219_v55, %v2780_v60  ;;  %v1646_v59 = vpop.f32.mrb[27].mxu1 }
 0x1ad   : > { %1454 = vst [vmem:[%s2789_s20 + $0xa8] sm:$0xf] %v2079_v46  ;;  %v2080_v56 = vpack.c.bf16 %v1375_v48, %v1375_v48  ;;  %v1682_v0 = vmax.f32 %v1644_v54, 0.0  ;;  %v1647_v1 = vadd.f32 %v2780_v60, %v1646_v59 }
 0x1ae   : > { %1452 = vst [vmem:[%s2789_s20 + $0x88] sm:$0xf] %v2077_v52  ;;  %v2078_v61 = vpack.c.bf16 %v1373_v53, %v1373_v53  ;;  %v2095_v4 = vpack.c.bf16 %v1684_v57, %v1684_v57  ;;  %v1685_v17 = vmax.f32 %v1655_v58, 0.0 }
 0x1af   : > { %1455 = vst [vmem:[%s2789_s20 + $0xb8] sm:$0xf] %v2080_v56  ;;  %v2093_v5 = vpack.c.bf16 %v1682_v0, %v1682_v0  ;;  %v1683_v6 = vmax.f32 %v1647_v1, 0.0 }
 0x1b0   : > { %1453 = vst [vmem:[%s2789_s20 + $0x98] sm:$0xf] %v2078_v61  ;;  %1764 = vst [vmem:[%s2789_s20 + $0xac] sm:$0xf] %v2095_v4  ;;  %v2096_v9 = vpack.c.bf16 %v1685_v17, %v1685_v17 }
 0x1b1   : > { %1762 = vst [vmem:[%s2789_s20 + $0x8c] sm:$0xf] %v2093_v5  ;;  %v2094_v10 = vpack.c.bf16 %v1683_v6, %v1683_v6  ;;  %v2222_v11 = vpop.f32.mrb[28].mxu1 }
 0x1b2   : > { %v2198_v2 = vpop.f32.mrb[28].mxu0  ;;  %1765 = vst [vmem:[%s2789_s20 + $0xbc] sm:$0xf] %v2096_v9  ;;  %v1668_v16 = vadd.f32 %v2222_v11, %v2780_v60  ;;  %v1659_v19 = vpop.f32.mrb[29].mxu1 }
 0x1b3   : > { %v1358_v15 = vadd.f32 %v2198_v2, %v2780_v60  ;;  %v1349_v18 = vpop.f32.mrb[29].mxu0  ;;  %1763 = vst [vmem:[%s2789_s20 + $0x9c] sm:$0xf] %v2094_v10  ;;  %v1660_v24 = vadd.f32 %v2780_v60, %v1659_v19  ;;  %v2223_v27 = vpop.f32.mrb[30].mxu1 }
 0x1b4   : > { %v1350_v23 = vadd.f32 %v2780_v60, %v1349_v18  ;;  %v2199_v25 = vpop.f32.mrb[30].mxu0  ;;  %v1688_v62 = vmax.f32 %v1668_v16, 0.0  ;;  %v1671_v30 = vadd.f32 %v2223_v27, %v2780_v60  ;;  %v1662_v36 = vpop.f32.mrb[31].mxu1 }
 0x1b5   : > { %v1378_v28 = vmax.f32 %v1358_v15, 0.0  ;;  %v1361_v29 = vadd.f32 %v2199_v25, %v2780_v60  ;;  %v1352_v35 = vpop.f32.mrb[31].mxu0  ;;  %v1686_v14 = vmax.f32 %v1660_v24, 0.0  ;;  %v1663_v31 = vadd.f32 %v2780_v60, %v1662_v36 }
 0x1b6   : > { %v1376_v12 = vmax.f32 %v1350_v23, 0.0  ;;  %v1353_v22 = vadd.f32 %v2780_v60, %v1352_v35  ;;  %v2099_v7 = vpack.c.bf16 %v1688_v62, %v1688_v62  ;;  %v1689_v20 = vmax.f32 %v1671_v30, 0.0 }
 0x1b7   : > { %v2083_v50 = vpack.c.bf16 %v1378_v28, %v1378_v28  ;;  %v1379_v32 = vmax.f32 %v1361_v29, 0.0  ;;  %v2097_v33 = vpack.c.bf16 %v1686_v14, %v1686_v14  ;;  %v1687_v47 = vmax.f32 %v1663_v31, 0.0 }
 0x1b8   : > { %v2081_v26 = vpack.c.bf16 %v1376_v12, %v1376_v12  ;;  %v1377_v34 = vmax.f32 %v1353_v22, 0.0  ;;  %1768 = vst [vmem:[%s2789_s20 + $0xec] sm:$0xf] %v2099_v7  ;;  %v2100_v13 = vpack.c.bf16 %v1689_v20, %v1689_v20 }
 0x1b9   : > { %1458 = vst [vmem:[%s2789_s20 + $0xe8] sm:$0xf] %v2083_v50  ;;  %v2084_v8 = vpack.c.bf16 %v1379_v32, %v1379_v32  ;;  %1766 = vst [vmem:[%s2789_s20 + $0xcc] sm:$0xf] %v2097_v33  ;;  %v2098_v60 = vpack.c.bf16 %v1687_v47, %v1687_v47 }
 0x1ba   : > { %1456 = vst [vmem:[%s2789_s20 + $0xc8] sm:$0xf] %v2081_v26  ;;  %v2082_v3 = vpack.c.bf16 %v1377_v34, %v1377_v34  ;;  %1769 = vst [vmem:[%s2789_s20 + $0xfc] sm:$0xf] %v2100_v13 }
 0x1bb   : > { %1459 = vst [vmem:[%s2789_s20 + $0xf8] sm:$0xf] %v2084_v8  ;;  %1767 = vst [vmem:[%s2789_s20 + $0xdc] sm:$0xf] %v2098_v60 }
 0x1bc   : > { %1457 = vst [vmem:[%s2789_s20 + $0xd8] sm:$0xf] %v2082_v3 }
 0x1bd PF: > { %s17_s28 = sadd.s32 1, %s2326_s28   ;;  %s2942_s24 = smov %s2318_s26 }
 0x1be   : > { %p14_p9 = scmp.ge.s32.totalorder %s17_s28, 6   ;;  %s2943_s25 = smov %s2322_s27 }
 0x1bf   : > { %s2944_s26 = smov %s2947_s29  ;;  %s2945_s27 = smov %s2951_s30 }
 0x1c0   :  { %16 = sbr.rel (!%p14_p9) target bundleno = 3 (0x3), region = 81 }

</bundles_post_ra>
